<compile_context>
chip_gen: v7x
topology: tpu7x:2x2x1
jax: 0.10.0
libtpu: 0.0.40
codegen_flags: <defaults>
</compile_context>

<pallas_src>
import functools
import math

import jax
import jax.numpy as jnp
from jax import lax
from jax.experimental import pallas as pl
from jax.experimental.pallas import tpu as pltpu


# ----------------------------------------------------------------------------
# Kernel 1: qkv 1x1-conv projection  (full 3C rows per batch -> no M underfill)
# ----------------------------------------------------------------------------
def _qkv_proj_kernel(x_ref, w_ref, o_ref):
    # x_ref: (C, tn) bf16   w_ref: (3C, C) bf16   o_ref: (3C, tn) bf16/f32
    o_ref[...] = jnp.dot(
        w_ref[...], x_ref[...], preferred_element_type=jnp.float32
    ).astype(o_ref.dtype)


# ----------------------------------------------------------------------------
# Kernel 2: flash attention over (B*head, q-tile, k-tile) with online softmax
# ----------------------------------------------------------------------------
def _flash_attn_kernel(q_ref, k_ref, v_ref, o_ref, m_sc, l_sc, acc_sc,
                       *, n_true, tk, masked):
    # q_ref: (ch, tq)  k_ref/v_ref: (ch, tk)  o_ref: (ch, tq)
    # m_sc/l_sc: (1, tq)  acc_sc: (ch, tq)
    ki = pl.program_id(2)

    @pl.when(ki == 0)
    def _():
        m_sc[...] = jnp.full_like(m_sc, -jnp.inf)
        l_sc[...] = jnp.zeros_like(l_sc)
        acc_sc[...] = jnp.zeros_like(acc_sc)

    q = q_ref[...]          # softmax scale already folded into the conv weight
    k = k_ref[...]
    v = v_ref[...]

    # logits^T[s, t] = sum_c k[c, s] * q[c, t] : contract dim 0 of both.
    # (tk, tq) layout keeps per-query statistics lane-oriented -> no transposes.
    s_t = lax.dot_general(
        k, q, (((0,), (0,)), ((), ())), preferred_element_type=jnp.float32
    )                                                           # (tk, tq)

    if masked:  # static: only traced when N was padded
        k_idx = ki * tk + lax.broadcasted_iota(jnp.int32, (tk, 1), 0)
        s_t = jnp.where(k_idx < n_true, s_t, jnp.float32(-1e30))

    m_prev = m_sc[...]                                          # (1, tq)
    m_new = jnp.maximum(m_prev, jnp.max(s_t, axis=0, keepdims=True))
    alpha = jnp.exp(m_prev - m_new)                             # (1, tq)
    p = jnp.exp(s_t - m_new)                                    # (tk, tq) f32

    l_sc[...] = alpha * l_sc[...] + jnp.sum(p, axis=0, keepdims=True)
    # Unnormalized accumulation: out[c, t] += sum_s v[c, s] * p[s, t]
    acc_sc[...] = alpha * acc_sc[...] + jnp.dot(
        v, p.astype(v.dtype), preferred_element_type=jnp.float32
    )
    m_sc[...] = m_new

    @pl.when(ki == pl.num_programs(2) - 1)
    def _():
        # Deferred normalization: one (ch, tq) multiply, reciprocal on EUP.
        inv_l = pl.reciprocal(l_sc[...], approx=True)           # (1, tq)
        o_ref[...] = (acc_sc[...] * inv_l).astype(o_ref.dtype)


# ----------------------------------------------------------------------------
# Host-side helpers
# ----------------------------------------------------------------------------
def _round_up(n, m):
    return ((n + m - 1) // m) * m


def _largest_divisor_tile(n, cap, quantum=128):
    """Largest multiple of `quantum` that divides n and is <= cap (n % 128 == 0)."""
    best = quantum
    t = quantum
    while t <= min(cap, n):
        if n % t == 0:
            best = t
        t += quantum
    return best


def _vmem_capacity_bytes():
    try:
        return int(pltpu.get_tpu_info().vmem_capacity_bytes)
    except Exception:
        return 64 * 1024 * 1024  # conservative (v7x-sized) fallback


def attention_block(x, w, head):
    """x: (B, C, N) f32, w: (3C, C) f32 (1x1-conv qkv weight). Returns (B, C, N)."""
    B, C, N = x.shape
    assert w.shape == (3 * C, C)
    assert C % head == 0
    ch = C // head
    assert ch % 8 == 0, "head_dim must be a multiple of 8 for sublane tiling"
    out_dtype = x.dtype
    scale = 1.0 / math.sqrt(ch)  # applied to BOTH q and k, exactly as in the spec

    # bf16 qkv intermediate when the head dim is bf16-sublane friendly (16),
    # otherwise fall back to an f32 intermediate (operands still bf16).
    qkv_dtype = jnp.bfloat16 if ch % 16 == 0 else jnp.float32
    qkv_isize = jnp.dtype(qkv_dtype).itemsize

    # Fold the scale into the q and k row-blocks of the conv weight (per-head
    # interleaved blocks of 3*ch rows: [q | k | v]).
    w_scaled = (
        w.reshape(head, 3, ch, C)
        * jnp.asarray([scale, scale, 1.0], dtype=w.dtype).reshape(1, 3, 1, 1)
    ).reshape(3 * C, C)

    # Pad N to a multiple of 128 (lane-dense tiles); padded key columns are
    # masked inside the attention kernel, padded query columns sliced off.
    n_pad = _round_up(N, 128)
    if n_pad != N:
        x = jnp.pad(x, ((0, 0), (0, 0), (0, n_pad - N)))

    # bf16 MXU operands (DEFAULT precision truncates f32 anyway) -> halves the
    # HBM traffic for x / w and the qkv writeback.
    x_bf = x.astype(jnp.bfloat16)
    w_bf = w_scaled.astype(jnp.bfloat16)

    vmem_cap = _vmem_capacity_bytes()
    big_vmem = vmem_cap >= 100 * 1024 * 1024          # 128-MiB parts (v5e/v6e)
    vmem_limit = (64 if big_vmem else 40) * 1024 * 1024

    tn = _largest_divisor_tile(n_pad, 512)            # projection N-tile
    tq = _largest_divisor_tile(n_pad, 1024 if big_vmem else 512)  # query tile
    tk = _largest_divisor_tile(n_pad, 512)            # key tile

    # ---------------- qkv projection: (B, 3C, n_pad) ----------------
    proj_cost = pl.CostEstimate(
        flops=2 * B * (3 * C) * C * n_pad,
        transcendentals=0,
        bytes_accessed=2 * (B * C * n_pad + 3 * C * C)
        + qkv_isize * B * 3 * C * n_pad,
    )
    qkv = pl.pallas_call(
        _qkv_proj_kernel,
        out_shape=jax.ShapeDtypeStruct((B, 3 * C, n_pad), qkv_dtype),
        grid_spec=pltpu.PrefetchScalarGridSpec(
            num_scalar_prefetch=0,
            grid=(B, n_pad // tn),
            in_specs=[
                pl.BlockSpec((None, C, tn), lambda b, n: (b, 0, n)),
                pl.BlockSpec((3 * C, C), lambda b, n: (0, 0)),
            ],
            out_specs=pl.BlockSpec((None, 3 * C, tn), lambda b, n: (b, 0, n)),
        ),
        compiler_params=pltpu.CompilerParams(
            dimension_semantics=("parallel", "parallel"),
            vmem_limit_bytes=vmem_limit,
        ),
        cost_estimate=proj_cost,
    )(x_bf, w_bf)

    # Per-(batch, head) contiguous [q | k | v] row blocks, same as torch's
    # reshape(B*head, 3*ch, N).chunk(3, dim=1).
    qkv = qkv.reshape(B * head, 3 * ch, n_pad)

    # ---------------- flash attention: (B*head, ch, n_pad) ----------------
    nq = n_pad // tq
    nk = n_pad // tk
    attn_cost = pl.CostEstimate(
        flops=4 * B * C * n_pad * n_pad,               # qk^T and p@v
        transcendentals=B * head * n_pad * n_pad,      # exp
        bytes_accessed=qkv_isize * B * head * ch * n_pad * (1 + 2 * nq)
        + 4 * B * C * n_pad,
    )
    kernel = functools.partial(
        _flash_attn_kernel, n_true=N, tk=tk, masked=(n_pad != N)
    )
    out = pl.pallas_call(
        kernel,
        out_shape=jax.ShapeDtypeStruct((B * head, ch, n_pad), out_dtype),
        grid_spec=pltpu.PrefetchScalarGridSpec(
            num_scalar_prefetch=0,
            grid=(B * head, nq, nk),
            in_specs=[
                # q / k / v blocks read from the same qkv array: block index
                # 0 / 1 / 2 along the 3*ch axis selects the q / k / v rows.
                pl.BlockSpec((None, ch, tq), lambda bh, qi, ki: (bh, 0, qi)),
                pl.BlockSpec((None, ch, tk), lambda bh, qi, ki: (bh, 1, ki)),
                pl.BlockSpec((None, ch, tk), lambda bh, qi, ki: (bh, 2, ki)),
            ],
            out_specs=pl.BlockSpec((None, ch, tq), lambda bh, qi, ki: (bh, 0, qi)),
            scratch_shapes=[
                pltpu.VMEM((1, tq), jnp.float32),    # running max
                pltpu.VMEM((1, tq), jnp.float32),    # running sum
                pltpu.VMEM((ch, tq), jnp.float32),   # unnormalized accumulator
            ],
        ),
        compiler_params=pltpu.CompilerParams(
            dimension_semantics=("parallel", "parallel", "arbitrary"),
            vmem_limit_bytes=vmem_limit,
        ),
        cost_estimate=attn_cost,
    )(qkv, qkv, qkv)

    out = out.reshape(B, C, n_pad)
    if n_pad != N:
        out = out[:, :, :N]
    return out


def reference_attention_block(x, w, head):
    """Pure-JAX reference mirroring the PyTorch forward exactly (f32, HIGHEST)."""
    B, C, N = x.shape
    ch = C // head
    scale = 1.0 / math.sqrt(ch)
    qkv = jnp.einsum('oc,bcn->bon', w, x, precision=jax.lax.Precision.HIGHEST)
    qkv = qkv.reshape(B * head, 3 * ch, N)
    q, k, v = qkv[:, :ch], qkv[:, ch:2 * ch], qkv[:, 2 * ch:]
    attn = jnp.einsum('bct,bcs->bts', q * scale, k * scale,
                      precision=jax.lax.Precision.HIGHEST)
    attn = jax.nn.softmax(attn, axis=-1)
    out = jnp.einsum('bts,bcs->bct', attn, v,
                     precision=jax.lax.Precision.HIGHEST)
    return out.reshape(B, C, N)


if __name__ == "__main__":
    def _run_case(B, C, N, head):
        key = jax.random.PRNGKey(0)
        kx, kw = jax.random.split(key)
        x = jax.random.normal(kx, (B, C, N), dtype=jnp.float32)
        # Deterministic stand-in for nn.Conv2d(C, 3C, 1, bias=False).weight[:, :, 0, 0]
        w = jax.random.normal(kw, (3 * C, C), dtype=jnp.float32) * (1.0 / math.sqrt(C))

        out = jax.block_until_ready(attention_block(x, w, head))
        ref = reference_attention_block(x, w, head)
        assert out.shape == (B, C, N), out.shape
        max_err = float(jnp.max(jnp.abs(out - ref)))
        # Kernel stores q/k/v in bf16 and runs single-pass bf16 MXU matmuls
        # (f32 accumulation); compare vs the f32/HIGHEST reference accordingly.
        assert jnp.allclose(out, ref, rtol=5e-2, atol=5e-2), max_err

    _run_case(2, 32, 128, 2)   # lane-aligned N (bf16 qkv, ch = 16)
    _run_case(1, 32, 100, 2)   # ragged N -> padded to 128, masked key tail
    print("KERNEL_OK")
</pallas_src>

<mosaic_0001>
module attributes {stable_mosaic.version = 11 : i64} {
  func.func @_qkv_proj_kernel(%arg0: i32, %arg1: i32, %arg2: memref<1x32x128xbf16, #tpu.memory_space<vmem>>, %arg3: memref<96x32xbf16, #tpu.memory_space<vmem>>, %arg4: memref<1x96x128xbf16, #tpu.memory_space<vmem>>) attributes {dimension_semantics = [#tpu.dimension_semantics<parallel>, #tpu.dimension_semantics<parallel>], iteration_bounds = array<i64: 2, 1>, scalar_prefetch = 0 : i64, scratch_operands = 0 : i64, tpu.core_type = #tpu.core_type<tc>, window_params = [{transform_indices = @transform_0, window_bounds = array<i64: 1, 32, 128>}, {pipeline_mode = #tpu.pipeline_mode<synchronous>, transform_indices = @transform_1, window_bounds = array<i64: 96, 32>}, {transform_indices = @transform_2, window_bounds = array<i64: 1, 96, 128>}]} {
    %c0 = arith.constant 0 : index
    %c0_0 = arith.constant 0 : index
    %0 = vector.load %arg3[%c0, %c0_0] : memref<96x32xbf16, #tpu.memory_space<vmem>>, vector<96x32xbf16>
    %c0_1 = arith.constant 0 : index
    %c0_2 = arith.constant 0 : index
    %c0_3 = arith.constant 0 : index
    %1 = vector.load %arg2[%c0_1, %c0_2, %c0_3] : memref<1x32x128xbf16, #tpu.memory_space<vmem>>, vector<1x32x128xbf16>
    %2 = vector.shape_cast %1 : vector<1x32x128xbf16> to vector<32x128xbf16>
    %cst = arith.constant dense<0.000000e+00> : vector<96x128xf32>
    %3 = tpu.matmul %0, %2, %cst {dimension_numbers = #tpu.dot_dimension_numbers<[1], [0], [0], [1], [0, 0, 1, 1], [], []>} : vector<96x32xbf16>, vector<32x128xbf16>, vector<96x128xf32> -> vector<96x128xf32>
    %4 = arith.truncf %3 : vector<96x128xf32> to vector<96x128xbf16>
    %c0_4 = arith.constant 0 : index
    %c0_5 = arith.constant 0 : index
    %c0_6 = arith.constant 0 : index
    %5 = vector.load %arg4[%c0_4, %c0_5, %c0_6] : memref<1x96x128xbf16, #tpu.memory_space<vmem>>, vector<1x96x128xbf16>
    %6 = vector.shape_cast %5 : vector<1x96x128xbf16> to vector<96x128xbf16>
    %7 = vector.shape_cast %4 : vector<96x128xbf16> to vector<1x96x128xbf16>
    tpu.vector_store %arg4[%c0_4, %c0_5, %c0_6], %7 {strides = array<i32>} : memref<1x96x128xbf16, #tpu.memory_space<vmem>>, vector<1x96x128xbf16>,
    return
  }
  func.func @transform_0(%arg0: i32, %arg1: i32) -> (i32, i32, i32) {
    %c0_i32 = arith.constant 0 : i32
    %c0_i32_0 = arith.constant 0 : i32
    return %arg0, %c0_i32, %arg1 : i32, i32, i32
  }
  func.func @transform_1(%arg0: i32, %arg1: i32) -> (i32, i32) {
    %c0_i32 = arith.constant 0 : i32
    %c0_i32_0 = arith.constant 0 : i32
    %c0_i32_1 = arith.constant 0 : i32
    return %c0_i32, %c0_i32_0 : i32, i32
  }
  func.func @transform_2(%arg0: i32, %arg1: i32) -> (i32, i32, i32) {
    %c0_i32 = arith.constant 0 : i32
    %c0_i32_0 = arith.constant 0 : i32
    return %arg0, %c0_i32, %arg1 : i32, i32, i32
  }
}

</mosaic_0001>

<bundles_post_ra>
// kernel: tpu_custom_call.1
= control target key start
LH: loop header
LB: loop body
LE: loop exit
PB: predicated region body
PF: predicated region fallthrough
CT: control target
= control target key end

     0   :  { %7 = vsyncpa [#allocation3], 0  ;;  %s899_s0 = inlined_call_operand.vmem [shape: bf16[2,32,128], index: 0, kind: input, shape index: {}]   ;;  %s900_s1 = inlined_call_operand.vmem [shape: bf16[96,32], index: 1, kind: input, shape index: {}]   ;;  %s901_s2 = inlined_call_operand.hbm [shape: bf16[2,96,128], index: 2, kind: output, shape index: {}]  }
   0x1   :  { %9 = vsyncpa [#allocation3 + $0x1], 0  ;;  %s756_s9 = smov 0   ;;  %s758_s10 = smov 0  }
   0x2   :  { %s760_s11 = smov 0   ;;  %s762_s12 = smov 0  }
   0x3   :  { %s764_s13 = smov 0   ;;  %s766_s14 = smov 0  }
   0x4 LB: > { %s479_s15 = sadd.s32 4294967295, %s736_s14   ;;  %s480_s16 = sadd.s32 4294967294, %s736_s14   ;;  %s736_s14 = sphi %s766_s14, %s15_s14   ;;  %s732_s13 = sphi %s764_s13, %s908_s13   ;;  %s728_s12 = sphi %s762_s12, %s907_s12   ;;  %s724_s11 = sphi %s760_s11, %s906_s11   ;;  %s720_s10 = sphi %s758_s10, %s905_s10   ;;  %s716_s9 = sphi %s756_s9, %s904_s9  }
   0x5   : > { %s27_s17 = sadd.s32 1, %s732_s13  ;;  %s85_s18 = sadd.s32 1, %s724_s11 }
   0x6   : > { %p29_p0 = scmp.ge.s32.totalorder %s27_s17, 2  ;;  %p95_p1 = scmp.ne.s32.totalorder %s724_s11, %s720_s10 }
   0x7   : > { %p96_p2 = scmp.eq.s32.totalorder %s479_s15, 1  ;;  %p101_p3 = scmp.ne.s32.totalorder %s720_s10, %s716_s9 }
   0x8   : > { %s910_s17 = smov (%p29_p0, %s27_s17), 0  ;;  %p102_p5 = scmp.eq.s32.totalorder %s480_s16, 1 }
   0x9   : > { %p796_p4 = por %p96_p2, %p95_p1  ;;  %s80_s20 = ssub.s32 %s732_s13, %s910_s17 }
   0xa   : > { %p483_p6 = scmp.ge.s32.totalorder %s736_s14, 1  ;;  %p83_p7 = scmp.eq.s32.totalorder %s80_s20, 0 }
   0xb   : > { %p803_p8 = por %p102_p5, %p101_p3  ;;  %p134_p9 = scmp.lt.s32.totalorder %s736_s14, 3 }
   0xc   : > { %s809_s22 = scalar_select %p83_p7, %s724_s11, %s85_s18  }
   0xd   : > { %p135_p10 = pnand %p483_p6, %p134_p9 }
   0xe   : > { %p159_p11 = scmp.lt.s32.totalorder (!%p135_p10), %s728_s12, 1  ;;  %v652_v0 = vld [vmem:[%s900_s1 + $0x10] sm:$0xff] (!%p135_p10)   ;;  %vm226_vm0 = vcmask (!%p135_p10), 261120   ;;  %v654_v1 = vld [vmem:[%s900_s1] sm:$0xff] (!%p135_p10)   ;;  %v653_v4 = vld [vmem:[%s900_s1 + $0x18] sm:$0xff] (!%p135_p10)   ;;  %s156_s20 = sand.u32 (!%p135_p10), 1, %s720_s10  }
   0xf   : > { %138 = sbr.rel (%p135_p10) target bundleno = 275 (0x113), region = 28  ;;  %579 = vmatprep.mubr.msk.bf16.mxu1 (!%p135_p10), %vm226_vm0, %v652_v0  ;;  %575 = vmatprep.mubr.msk.bf16.mxu0 (!%p135_p10), %vm226_vm0, %v654_v1  ;;  %v655_v5 = vld [vmem:[%s900_s1 + $0x8] sm:$0xff] (!%p135_p10)   ;;  %v656_v6 = vld [vmem:[%s900_s1 + $0x20] sm:$0xff] (!%p135_p10)  }
  0x10   : > { %v657_v7 = vld [vmem:[%s900_s1 + $0x28] sm:$0xff] (!%p135_p10)   ;;  %s591_s23 = smul.u32 (!%p135_p10), 48, %s156_s20 }
  0x12   : > { %s158_s24 = scalar_lea.vmem (!%p135_p10), [#allocation2], %s591_s23 }
  0x13   : > { %s401_s26 = sshll.u32 (!%p135_p10), %s158_s24, 4  ;;  %s844_s26 = int_to_ptr.vmem [resolvable:$true] %s401_s26 }
  0x14   : > { %s658_s30 = scalar_lea.vmem (!%p135_p10), %s844_s26, 768 }
  0x15   : > { %p659_p12 = scmp.ne.s32.totalorder (!%p135_p10), %s844_s26, %s658_s30 }
  0x16   : > { %s160_s25 = scalar_select %p159_p11, %s728_s12, 1 }
  0x17   : > { %p660_p13 = pnand %p659_p12, %p796_p4 }
  0x18   : > { %s515_s28 = sshll.u32 %s160_s25, 4  ;;  %s592_s25 = smul.u32 768, %s728_s12 }
  0x19   : > { %s166_s3 = scalar_lea.vmem %s899_s0, %s515_s28  ;;  %s853_s12 = scalar_lea.sflag [#allocation3], %s156_s20 }
  0x1a   : > { %v650_v2 = vld [vmem:[%s166_s3] sm:$0xff]   ;;  %v651_v3 = vld [vmem:[%s166_s3 + $0x8] sm:$0xff]   ;;  %s849_s29 = scalar_lea.hbm %s901_s2, %s592_s25  ;;  %p661_p0 = pneg %p660_p13 }
  0x1b   : > { %587 = vmatprep.subr.bf16.mxu1 %v650_v2  ;;  %571 = vmatprep.subr.bf16.mxu0 %v650_v2  ;;  %s738_s3 = smov [#allocation2]  }
  0x1c   : > { %589 = vmatpush3.bf16.msra.mxu1 %v650_v2  ;;  %572 = vmatpush3.bf16.msra.mxu0 %v650_v2  ;;  %s662_s4 = sshll.u32 %s738_s3, 4  ;;  %s663_s4 = int_to_ptr.vmem [resolvable:$false] %s662_s4 }
  0x1d   : > { %588 = vmatprep.subr.bf16.mxu1 %v651_v3  ;;  %573 = vmatprep.subr.bf16.mxu0 %v651_v3  ;;  %s664_s5 = scalar_lea.vmem %s663_s4, 1536  ;;  %p665_p1 = scmp.lt.s32.totalorder %s844_s26, %s663_s4 }
  0x1e   : > { %p666_p2 = scmp.lt.s32.totalorder %s664_s5, %s658_s30 }
  0x20   : > { %590 = vmatpush3.bf16.msra.mxu1 %v651_v3  ;;  %574 = vmatpush3.bf16.msra.mxu0 %v651_v3  ;;  %p667_p3 = por %p666_p2, %p665_p1 }
  0x22   : > { %p668_p5 = pnand %p667_p3, %p661_p0 }
  0x23   : > { %580 = vmatmul.mubr.msk.bf16.vlgmr.msra.gmra.mrb[0].mxu1 %vm226_vm0, %v653_v4  ;;  %576 = vmatmul.mubr.msk.bf16.vlgmr.msra.gmra.mrb[0].mxu0 %vm226_vm0, %v655_v5 }
  0x24   : > { %583 = vmatprep.mubr.msk.bf16.mxu1 %vm226_vm0, %v656_v6 }
  0x2b   : > { %584 = vmatmul.mubr.msk.bf16.gmra.mrb[4].mxu1 %vm226_vm0, %v657_v7 }
  0xf6   : > { %v581_v8 = vpop.f32.mrb[0].mxu1  ;;  %v577_v9 = vpop.f32.mrb[0].mxu0 }
  0xf7   : > { %v295_v10 = vpop.f32.mrb[1].mxu1  ;;  %v279_v11 = vpop.f32.mrb[1].mxu0 }
  0xf8   : > { %v582_v12 = vpop.f32.mrb[2].mxu1  ;;  %v578_v13 = vpop.f32.mrb[2].mxu0 }
  0xf9   : > { %v546_v14 = vpack.c.bf16 %v582_v12, %v581_v8  ;;  %v298_v15 = vpop.f32.mrb[3].mxu1  ;;  %v536_v16 = vpack.c.bf16 %v578_v13, %v577_v9  ;;  %v282_v17 = vpop.f32.mrb[3].mxu0 }
  0xfa   : > { %v541_v18 = vpack.c.bf16 %v298_v15, %v295_v10  ;;  %v531_v19 = vpack.c.bf16 %v282_v17, %v279_v11 }
  0xfb   : > { %560 = vst [vmem:[%s158_s24 + $0x18] sm:$0xff] %v546_v14   ;;  %558 = vst [vmem:[%s158_s24 + $0x8] sm:$0xff] %v536_v16  }
  0xfc   : > { %559 = vst [vmem:[%s158_s24 + $0x10] sm:$0xff] %v541_v18   ;;  %532 = vst [vmem:[%s158_s24] sm:$0xff] %v531_v19  }
  0xfe   : > { %v585_v20 = vpop.f32.mrb[4].mxu1 }
  0xff   : > { %v311_v21 = vpop.f32.mrb[5].mxu1 }
 0x100   : > { %v586_v22 = vpop.f32.mrb[6].mxu1 }
 0x101   : > { %v556_v23 = vpack.c.bf16 %v586_v22, %v585_v20  ;;  %v314_v24 = vpop.f32.mrb[7].mxu1 }
 0x102   : > { %v551_v25 = vpack.c.bf16 %v314_v24, %v311_v21 }
 0x103   : > { %562 = vst [vmem:[%s158_s24 + $0x28] sm:$0xff] %v556_v23  }
 0x104   : > { %561 = vst [vmem:[%s158_s24 + $0x20] sm:$0xff] %v551_v25  }
 0x105   : > { %671 = shalt.err (!%p668_p5)
}
 0x106   : > { %s672_s6 = scalar_lea.hbm %s849_s29, 768  ;;  %s676_s15 = scalar_lea.hbm %s901_s2, 1536 }
 0x107   : > { %p673_p6 = scmp.ne.s32.totalorder %s849_s29, %s672_s6  ;;  %p677_p10 = scmp.lt.u32.totalorder %s849_s29, %s901_s2 }
 0x108   : > { %p678_p11 = scmp.lt.u32.totalorder %s676_s15, %s672_s6  ;;  %p680_p13 = scmp.lt.u32.totalorder %s672_s6, %s849_s29 }
 0x109   : > { %p674_p7 = pnand %p673_p6, %p796_p4 }
 0x10a   : > { %p679_p12 = por %p678_p11, %p677_p10 }
 0x10b   : > { %p675_p9 = pneg %p674_p7 }
 0x10c   : > { %p681_p0 = por %p680_p13, %p679_p12 }
 0x10e   : > { %p682_p1 = pnand %p681_p0, %p675_p9 }
 0x110   : > { %685 = shalt.err (!%p682_p1)
}
 0x111   : > { %s739_s20 = smov 64   ;;  %s740_s23 = smov 4  }
 0x112   : > { %593 = dma.vmem_to_hbm [thread:$0]  (%p796_p4), %s844_s26, 768, %s849_s29, %s853_s12, %s739_s20, %s739_s20, %s740_s23  }
 0x113 PF: > { %p599_p2 = scmp.ge.s32.totalorder %s736_s14, 2  ;;  %s416_s24 = sand.u32 1, %s716_s9  }
 0x114   : > { %s417_s25 = scalar_lea.sflag [#allocation3], %s416_s24 }
 0x115   : > { %p596_p3 = pnand %p599_p2, %p803_p8 }
 0x117   : > { %711 = dma.done.wait (!%p596_p3), %s417_s25, 768  }
 0x118   : > { %713 = vsyncadd (!%p596_p3), %s417_s25, 4294966528  ;;  %s15_s14 = sadd.s32 1, %s736_s14   ;;  %s904_s9 = smov %s720_s10 }
 0x119   : > { %p12_p5 = scmp.ge.s32.totalorder %s15_s14, 4   ;;  %s905_s10 = smov %s724_s11 }
 0x11a   : > { %s906_s11 = smov %s809_s22  ;;  %s907_s12 = smov %s732_s13 }
 0x11b   : > { %s908_s13 = smov %s910_s17  ;;  %14 = sbr.rel (!%p12_p5) target bundleno = 4 (0x4), region = 63 }
 0x122   :  { %422 = vsyncpa [#allocation3], 1 }
 0x123   :  { %424 = vsyncpa [#allocation3 + $0x1], 1 }

</bundles_post_ra>
